<compile_context>
chip_gen: v5e
topology: v5e:2x2
jax: 0.10.0
libtpu: 0.0.40
codegen_flags: <defaults>
</compile_context>

<pallas_src>
import functools

import jax
import jax.numpy as jnp
from jax.experimental import pallas as pl
from jax.experimental.pallas import tpu as pltpu

LANES = 128  # TPU vreg lane width


# ---------------------------------------------------------------------------
# One-time parameter preparation (outside the forward hot path).
# ---------------------------------------------------------------------------
def fuse_qkv_weights(w_key, w_query, w_value, *, dtype=None):
    """Fuse K/Q/V projections into one (C, 3*P) matrix, P = round_up(H, 128).

    * The attention scale n_embed**-0.5 (C, matching the PyTorch reference) is
      folded into the query weights.
    * Each projection block starts at a 128-lane-aligned column offset
      [0, P, 2P], so slicing k/q/v out of the fused matmul result inside the
      kernel is a free layout view.  Padding columns are zero and therefore do
      not change q@k^T or p@v.
    """
    C, H = w_key.shape
    assert w_query.shape == (C, H) and w_value.shape == (C, H)
    dtype = dtype or w_key.dtype
    P = ((H + LANES - 1) // LANES) * LANES
    scale = jnp.asarray(C, jnp.float32) ** -0.5  # n_embed**-0.5, as in the reference
    w = jnp.zeros((C, 3 * P), dtype=jnp.float32)
    w = w.at[:, 0:H].set(w_key.astype(jnp.float32))
    w = w.at[:, P:P + H].set(w_query.astype(jnp.float32) * scale)
    w = w.at[:, 2 * P:2 * P + H].set(w_value.astype(jnp.float32))
    return w.astype(dtype)


# ---------------------------------------------------------------------------
# Kernel.
# ---------------------------------------------------------------------------
def head_kernel(x_ref, wqkv_ref, o_ref, *, head_size, approx_reciprocal):
    # x_ref:    (Bt, T, C)    block of batch elements
    # wqkv_ref: (C, 3*P)      fused, pre-scaled, lane-aligned [K|Q|V] weights
    # o_ref:    (Bt, T, H)
    Bt, T, C = x_ref.shape
    three_p = wqkv_ref.shape[-1]
    P = three_p // 3
    H = head_size
    cd = x_ref.dtype  # MXU input dtype (bf16 stays bf16; f32 stays f32)

    # Fused QKV projection for the whole batch block in one MXU pass, f32
    # accumulation.  The (Bt,T,C)->(Bt*T,C) reshape is a free view because the
    # wrapper guarantees T is sublane-aligned for this dtype.
    x2d = x_ref[...].reshape(Bt * T, C)
    qkv = jnp.dot(x2d, wqkv_ref[...], preferred_element_type=jnp.float32)
    qkv = qkv.reshape(Bt, T, three_p)

    # 128-lane-aligned slices -> free views (no lane rotates).  The
    # 1/sqrt(n_embed) scale is already folded into the Q weights.
    k = qkv[..., 0 * P:1 * P].astype(cd)
    q = qkv[..., 1 * P:2 * P].astype(cd)
    v = qkv[..., 2 * P:3 * P].astype(cd)

    # wei = q @ k^T, contracting the (zero-padded) head dim; padding columns
    # are zero so they contribute nothing.  f32 accumulation on the MXU.
    wei = jnp.einsum('btd,bsd->bts', q, k,
                     preferred_element_type=jnp.float32)      # (Bt, T, T)

    # Causal mask — built once per grid step (O(T^2), independent of Bt).
    # TODO(synk): in the flash-style tiled rewrite only diagonal q/kv tiles
    #             need this mask; above-diagonal tiles are skipped entirely.
    row = jax.lax.broadcasted_iota(jnp.int32, (T, T), 0)
    col = jax.lax.broadcasted_iota(jnp.int32, (T, T), 1)
    wei = jnp.where((row >= col)[None, :, :], wei, -jnp.inf)

    # Softmax over the key axis, in f32 (v5e has no bf16 VPU/EUP).
    # TODO(synk): on v6e/v7x at long T the single EUP (exp) is the binding
    #             unit; a bf16 exp path there roughly halves softmax cost.
    m = jnp.max(wei, axis=-1, keepdims=True)
    p = jnp.exp(wei - m)
    denom = jnp.sum(p, axis=-1, keepdims=True)
    if approx_reciprocal:
        p = p * pl.reciprocal(denom, approx=True)   # EUP slot, ~1e-3 rel err
    else:
        p = p / denom                               # exact, matches reference

    # dropout: identity (eval mode / p == 0).

    out = jnp.einsum('bts,bsd->btd', p.astype(cd), v,
                     preferred_element_type=jnp.float32)      # (Bt, T, P)
    # Only the first H output columns are meaningful (the rest are zeros from
    # the padded V block); slice at lane offset 0 is free.
    o_ref[...] = out[..., 0:H].astype(o_ref.dtype)


# ---------------------------------------------------------------------------
# Wrapper.
# ---------------------------------------------------------------------------
def _vmem_budget_bytes():
    """Per-TensorCore VMEM budget: half of physical capacity (headroom for
    compiler-internal scratch), queried from the device when possible."""
    try:
        cap = int(pltpu.get_tpu_info().vmem_capacity_bytes)
    except Exception:
        cap = 64 * 1024 * 1024  # conservative (v7x-sized) fallback
    return cap // 2


def head_forward(x, w_qkv, head_size, *, batch_block=None, approx_reciprocal=False):
    """x: (B, T, C); w_qkv: fused (C, 3*P) from fuse_qkv_weights. -> (B, T, H)."""
    B, T, C = x.shape
    Cw, three_p = w_qkv.shape
    assert Cw == C and three_p % 3 == 0
    P = three_p // 3
    H = head_size
    assert H <= P

    itemsize = jnp.dtype(x.dtype).itemsize
    sublane = 16 if x.dtype == jnp.bfloat16 else 8
    if T % sublane != 0:
        # TODO(synk): pad T or use a 3-D dot_general path for unaligned T.
        raise ValueError(
            f"T={T} must be a multiple of {sublane} for dtype {x.dtype} so the "
            "in-kernel (Bt,T,C)->(Bt*T,C) reshape stays a free view.")

    budget = _vmem_budget_bytes()
    if batch_block is None:
        # Double-buffered x / out blocks + double-buffered weight + f32
        # intermediates (qkv, scores, probs, padded out).  The 2*T*T f32
        # scores/probs term is what hits v7x's smaller VMEM first.
        weight_bytes = 2 * C * three_p * itemsize
        per_elem = (2 * (T * C + T * H) * itemsize
                    + 4 * (T * three_p + 2 * T * T + T * P))
        batch_block = max(1, min(B, (budget - weight_bytes) // max(per_elem, 1)))
        # v7x has 2 TensorCores per chip: keep >= 2 parallel grid steps when we can.
        if B >= 2:
            batch_block = min(batch_block, B // 2)
        while B % batch_block != 0:
            batch_block -= 1

    grid = (B // batch_block,)

    kernel = functools.partial(head_kernel, head_size=H,
                               approx_reciprocal=approx_reciprocal)

    grid_spec = pltpu.PrefetchScalarGridSpec(
        num_scalar_prefetch=0,
        grid=grid,
        in_specs=[
            pl.BlockSpec((batch_block, T, C), lambda b: (b, 0, 0)),
            # Grid-invariant weight (constant index_map).
            pl.BlockSpec((C, three_p), lambda b: (0, 0)),
        ],
        out_specs=pl.BlockSpec((batch_block, T, H), lambda b: (b, 0, 0)),
    )

    return pl.pallas_call(
        kernel,
        out_shape=jax.ShapeDtypeStruct((B, T, H), x.dtype),
        grid_spec=grid_spec,
        compiler_params=pltpu.CompilerParams(
            dimension_semantics=("parallel",),
            vmem_limit_bytes=int(budget)),
    )(x, w_qkv)


def head_reference(x, w_key, w_query, w_value):
    """Pure-JAX reference matching the PyTorch forward."""
    B, T, C = x.shape
    k = x @ w_key
    q = x @ w_query
    v = x @ w_value
    wei = (q @ jnp.swapaxes(k, -2, -1)) * (C ** -0.5)
    tril = jnp.tril(jnp.ones((T, T), dtype=bool))
    wei = jnp.where(tril, wei, -jnp.inf)
    wei = jax.nn.softmax(wei, axis=-1)
    return wei @ v


if __name__ == "__main__":
    # Small shapes consistent with the module: block_size=8 (=T), n_embed=32, head_size=16
    B, T, C, Hd = 2, 8, 32, 16

    key = jax.random.PRNGKey(0)
    kx, kk, kq, kv = jax.random.split(key, 4)
    x = jax.random.normal(kx, (B, T, C), dtype=jnp.float32)
    bound = 1.0 / (C ** 0.5)  # nn.Linear-style uniform init, bias=False
    w_key = jax.random.uniform(kk, (C, Hd), minval=-bound, maxval=bound, dtype=jnp.float32)
    w_query = jax.random.uniform(kq, (C, Hd), minval=-bound, maxval=bound, dtype=jnp.float32)
    w_value = jax.random.uniform(kv, (C, Hd), minval=-bound, maxval=bound, dtype=jnp.float32)

    # One-time parameter prep (outside the forward hot path).
    w_qkv = fuse_qkv_weights(w_key, w_query, w_value, dtype=x.dtype)

    out = head_forward(x, w_qkv, head_size=Hd)
    out = jax.block_until_ready(out)

    ref = head_reference(x, w_key, w_query, w_value)
    assert out.shape == (B, T, Hd)
    assert jnp.allclose(out, ref, atol=1e-4, rtol=1e-4), "mismatch vs reference"

    print("KERNEL_OK")
</pallas_src>

<mosaic_0001>
module attributes {stable_mosaic.version = 11 : i64} {
  func.func @head_kernel(%arg0: i32, %arg1: memref<1x8x32xf32, #tpu.memory_space<vmem>>, %arg2: memref<32x384xf32, #tpu.memory_space<vmem>>, %arg3: memref<1x8x16xf32, #tpu.memory_space<vmem>>) attributes {dimension_semantics = [#tpu.dimension_semantics<parallel>], iteration_bounds = array<i64: 2>, scalar_prefetch = 0 : i64, scratch_operands = 0 : i64, tpu.core_type = #tpu.core_type<tc>, window_params = [{transform_indices = @transform_0, window_bounds = array<i64: 1, 8, 32>}, {pipeline_mode = #tpu.pipeline_mode<synchronous>, transform_indices = @transform_1, window_bounds = array<i64: 32, 384>}, {transform_indices = @transform_2, window_bounds = array<i64: 1, 8, 16>}]} {
    %c0 = arith.constant 0 : index
    %c0_0 = arith.constant 0 : index
    %c0_1 = arith.constant 0 : index
    %0 = vector.load %arg1[%c0, %c0_0, %c0_1] : memref<1x8x32xf32, #tpu.memory_space<vmem>>, vector<1x8x32xf32>
    %1 = vector.shape_cast %0 : vector<1x8x32xf32> to vector<8x32xf32>
    %c0_2 = arith.constant 0 : index
    %c0_3 = arith.constant 0 : index
    %2 = vector.load %arg2[%c0_2, %c0_3] : memref<32x384xf32, #tpu.memory_space<vmem>>, vector<32x384xf32>
    %cst = arith.constant dense<0.000000e+00> : vector<8x384xf32>
    %3 = tpu.matmul %1, %2, %cst {dimension_numbers = #tpu.dot_dimension_numbers<[1], [0], [0], [1], [0, 0, 1, 1], [], []>} : vector<8x32xf32>, vector<32x384xf32>, vector<8x384xf32> -> vector<8x384xf32>
    %4 = vector.shape_cast %3 : vector<8x384xf32> to vector<1x8x384xf32>
    %5 = vector.extract_strided_slice %4 {offsets = [0, 0, 0], sizes = [1, 8, 128], strides = [1, 1, 1]} : vector<1x8x384xf32> to vector<1x8x128xf32>
    %6 = vector.extract_strided_slice %4 {offsets = [0, 0, 128], sizes = [1, 8, 128], strides = [1, 1, 1]} : vector<1x8x384xf32> to vector<1x8x128xf32>
    %7 = vector.extract_strided_slice %4 {offsets = [0, 0, 256], sizes = [1, 8, 128], strides = [1, 1, 1]} : vector<1x8x384xf32> to vector<1x8x128xf32>
    "tpu.trace_start"() <{level = 10 : i32, message = "btd,bsd->bts"}> : () -> ()
    %cst_4 = arith.constant dense<0.000000e+00> : vector<1x8x8xf32>
    %8 = tpu.matmul %6, %5, %cst_4 {dimension_numbers = #tpu.dot_dimension_numbers<[2], [2], [1], [1], [0, 0, 0, 1, 1, 1], [0], [0]>} : vector<1x8x128xf32>, vector<1x8x128xf32>, vector<1x8x8xf32> -> vector<1x8x8xf32>
    "tpu.trace_stop"() : () -> ()
    %9 = tpu.iota {dimensions = array<i32: 0>} : vector<8x8xi32>
    %10 = tpu.iota {dimensions = array<i32: 1>} : vector<8x8xi32>
    %11 = arith.cmpi sge, %9, %10 : vector<8x8xi32>
    %12 = vector.shape_cast %11 : vector<8x8xi1> to vector<1x8x8xi1>
    %cst_5 = arith.constant 0xFF800000 : f32
    %13 = vector.broadcast %cst_5 : f32 to vector<1x8x8xf32>
    %14 = arith.select %12, %8, %13 : vector<1x8x8xi1>, vector<1x8x8xf32>
    %cst_6 = arith.constant dense<0xFF800000> : vector<1x8xf32>
    %15 = vector.multi_reduction <maximumf>, %14, %cst_6 [2] : vector<1x8x8xf32> to vector<1x8xf32>
    %16 = vector.shape_cast %15 : vector<1x8xf32> to vector<1x8x1xf32>
    %17 = vector.broadcast %16 : vector<1x8x1xf32> to vector<1x8x8xf32>
    %18 = arith.subf %14, %17 : vector<1x8x8xf32>
    %19 = math.exp %18 : vector<1x8x8xf32>
    %cst_7 = arith.constant dense<0.000000e+00> : vector<1x8xf32>
    %20 = vector.multi_reduction <add>, %19, %cst_7 [2] : vector<1x8x8xf32> to vector<1x8xf32>
    %21 = vector.shape_cast %20 : vector<1x8xf32> to vector<1x8x1xf32>
    %22 = vector.broadcast %21 : vector<1x8x1xf32> to vector<1x8x8xf32>
    %23 = arith.divf %19, %22 : vector<1x8x8xf32>
    "tpu.trace_start"() <{level = 10 : i32, message = "bts,bsd->btd"}> : () -> ()
    %cst_8 = arith.constant dense<0.000000e+00> : vector<1x8x128xf32>
    %24 = tpu.matmul %23, %7, %cst_8 {dimension_numbers = #tpu.dot_dimension_numbers<[2], [1], [1], [2], [0, 0, 0, 1, 1, 2], [0], [0]>} : vector<1x8x8xf32>, vector<1x8x128xf32>, vector<1x8x128xf32> -> vector<1x8x128xf32>
    "tpu.trace_stop"() : () -> ()
    %25 = vector.extract_strided_slice %24 {offsets = [0, 0, 0], sizes = [1, 8, 16], strides = [1, 1, 1]} : vector<1x8x128xf32> to vector<1x8x16xf32>
    %c0_9 = arith.constant 0 : index
    %c0_10 = arith.constant 0 : index
    %c0_11 = arith.constant 0 : index
    %26 = vector.load %arg3[%c0_9, %c0_10, %c0_11] : memref<1x8x16xf32, #tpu.memory_space<vmem>>, vector<1x8x16xf32>
    tpu.vector_store %arg3[%c0_9, %c0_10, %c0_11], %25 {strides = array<i32>} : memref<1x8x16xf32, #tpu.memory_space<vmem>>, vector<1x8x16xf32>,
    return
  }
  func.func @transform_0(%arg0: i32) -> (i32, i32, i32) {
    %c0_i32 = arith.constant 0 : i32
    %c0_i32_0 = arith.constant 0 : i32
    %c0_i32_1 = arith.constant 0 : i32
    return %arg0, %c0_i32, %c0_i32_0 : i32, i32, i32
  }
  func.func @transform_1(%arg0: i32) -> (i32, i32) {
    %c0_i32 = arith.constant 0 : i32
    %c0_i32_0 = arith.constant 0 : i32
    %c0_i32_1 = arith.constant 0 : i32
    return %c0_i32, %c0_i32_0 : i32, i32
  }
  func.func @transform_2(%arg0: i32) -> (i32, i32, i32) {
    %c0_i32 = arith.constant 0 : i32
    %c0_i32_0 = arith.constant 0 : i32
    %c0_i32_1 = arith.constant 0 : i32
    return %arg0, %c0_i32, %c0_i32_0 : i32, i32, i32
  }
}

</mosaic_0001>

<bundles_post_ra>
// kernel: tpu_custom_call.1
= control target key start
LH: loop header
LB: loop body
LE: loop exit
PB: predicated region body
PF: predicated region fallthrough
CT: control target
= control target key end

     0   :  { %7 = vsyncpa [#allocation3], 0  ;;  %s804_s0 = inlined_call_operand.hbm [shape: f32[2,8,32], index: 0, kind: input, shape index: {}]   ;;  %s805_s1 = inlined_call_operand.hbm [shape: f32[32,384], index: 1, kind: input, shape index: {}]   ;;  %s806_s2 = inlined_call_operand.hbm [shape: f32[2,8,16], index: 2, kind: output, shape index: {}]  }
   0x1   :  { %9 = vsyncpa [#allocation3 + $0x1], 0 }
   0x2   :  { %10 = vsyncpa [#allocation6], 0 }
   0x3   :  { %11 = vsyncpa [#allocation4], 0 }
   0x4   :  { %13 = vsyncpa [#allocation4 + $0x1], 0  ;;  %s658_s9 = smov 0   ;;  %s660_s10 = smov 0  }
   0x5   :  { %s662_s11 = smov 0   ;;  %s664_s12 = smov 0  }
   0x6 LB: > { %s108_s15 = sshll.u32 %s805_s1, 4  ;;  %s682_s16 = sadd.s32 4294967295, %s638_s12   ;;  %s638_s12 = sphi %s664_s12, %s816_s12   ;;  %s634_s11 = sphi %s662_s11, %s815_s11   ;;  %s630_s10 = sphi %s660_s10, %s814_s10   ;;  %s626_s9 = sphi %s658_s9, %s813_s9   ;;  %s109_s15 = int_to_ptr.hbm [resolvable:$true] %s108_s15 }
   0x7   : > { %p428_p0 = scmp.ge.s32.totalorder %s638_s12, 1  ;;  %p40_p1 = scmp.eq.s32.totalorder %s682_s16, 0 }
   0x8   : > { %p97_p2 = scmp.lt.s32.totalorder %s638_s12, 3  ;;  %s640_s18 = smov [#allocation5]  }
   0x9   : > { %s110_s19 = sshll.u32 %s640_s18, 4  ;;  %s641_s20 = smov 384   ;;  %s111_s19 = int_to_ptr.vmem [resolvable:$true] %s110_s19 }
   0xa   : > { %p687_p3 = pnand %p428_p0, %p97_p2  ;;  %s642_s21 = smov 24  }
   0xb   : > { %s427_s22 = sadd.s32 4294967294, %s638_s12   ;;  %s698_s23 = sadd.s32 1, %s638_s12  }
   0xc   : > { %p453_p4 = pneg %p687_p3  ;;  %s26_s24 = sadd.s32 1, %s634_s11 }
   0xd   : > { %s23_s25 = ssub.s32 %s638_s12, %s698_s23  ;;  %p33_p7 = scmp.ne.s32.totalorder %s634_s11, %s630_s10 }
   0xe   : > { %p454_p6 = pnand %p453_p4, %p40_p1  ;;  %p24_p8 = scmp.eq.s32.totalorder %s23_s25, 0 }
   0xf   : > { %p34_p9 = scmp.eq.s32.totalorder %s638_s12, 0  ;;  %p39_p10 = scmp.ne.s32.totalorder %s630_s10, %s626_s9 }
  0x10   : > { %456 = dma.hbm_to_vmem [thread:$0]  (!%p454_p6), %s109_s15, 1536, %s111_s19, [#allocation6], %s641_s20, %s641_s20, %s642_s21  }
  0x11   : > { %p84_p11 = scmp.eq.s32.totalorder %s682_s16, 1  ;;  %p714_p12 = por %p40_p1, %p39_p10 }
  0x12   : > { %s710_s26 = scalar_select %p24_p8, %s634_s11, %s26_s24  }
  0x13   : > { %p718_p13 = por %p84_p11, %p33_p7  ;;  %p90_p0 = scmp.eq.s32.totalorder %s427_s22, 1 }
  0x14   : > { %p35_p2 = por %p34_p9, %p33_p7  ;;  %s124_s29 = sand.u32 1, %s634_s11  }
  0x15   : > { %p723_p4 = por %p90_p0, %p39_p10  ;;  %p466_p6 = scmp.lt.s32.totalorder %s638_s12, 2 }
  0x16   : > { %s431_s3 = sshll.u32 %s124_s29, 3  ;;  %s432_s4 = sshll.u32 %s638_s12, 3 }
  0x17   : > { %s132_s7 = scalar_lea.hbm %s804_s0, %s432_s4  ;;  %s128_s13 = scalar_lea.vmem [#allocation2], %s431_s3 }
  0x18   : > { %s134_s8 = sshll.u32 %s132_s7, 4  ;;  %s136_s14 = sshll.u32 %s128_s13, 4  ;;  %s135_s8 = int_to_ptr.hbm [resolvable:$true] %s134_s8  ;;  %s137_s14 = int_to_ptr.vmem [resolvable:$true] %s136_s14 }
  0x19   : > { %p732_p8 = pnand %p466_p6, %p35_p2  ;;  %s125_s18 = scalar_lea.sflag [#allocation3], %s124_s29 }
  0x1a   : > { %s538_s19 = sshra.s32 %s135_s8, 4  ;;  %s545_s24 = scalar_lea.hbm %s804_s0, 16  ;;  %s539_s19 = int_to_ptr.hbm [resolvable:$true] %s538_s19 }
  0x1b   : > { %s540_s20 = scalar_lea.hbm %s539_s19, 8  ;;  %p542_p9 = pneg %p732_p8 }
  0x1c   : > { %p541_p7 = scmp.ne.s32.totalorder %s539_s19, %s540_s20  ;;  %p546_p0 = scmp.lt.s32.totalorder %s539_s19, %s804_s0 }
  0x1d   : > { %p547_p2 = scmp.lt.s32.totalorder %s545_s24, %s540_s20 }
  0x1e   : > { %p543_p10 = pnand %p542_p9, %p541_p7 }
  0x1f   : > { %p548_p6 = por %p547_p2, %p546_p0 }
  0x20   : > { %p544_p11 = pneg %p543_p10 }
  0x22   : > { %p549_p5 = pnand %p548_p6, %p544_p11 }
  0x24   : > { %552 = shalt.err (!%p549_p5)
}
  0x25   : > { %460 = dma.hbm_to_vmem [thread:$0]  (!%p732_p8), %s135_s8, 128, %s137_s14, %s125_s18  }
  0x26   : > { %145 = sbr.rel (%p687_p3) target bundleno = 715 (0x2cb), region = 28  ;;  %s749_s29 = sand.u32 (!%p687_p3), 1, %s630_s10  }
  0x27   : > { %s434_s4 = sshll.u32 (!%p687_p3), %s749_s29, 3  ;;  %s148_s5 = scalar_lea.sflag (!%p687_p3), [#allocation3], %s749_s29 }
  0x28   : > { %s151_s6 = scalar_lea.vmem (!%p687_p3), [#allocation2], %s434_s4 }
  0x2b   : > { %613 = dma.done.wait (%p714_p12), %s148_s5, 128  }
  0x2c   : > { %615 = vsyncadd (%p714_p12), %s148_s5, 4294967168 }
  0x2d   : > { %617 = dma.done.wait (%p40_p1), [#allocation6], 1536  }
  0x2e   : > { %619 = vsyncadd (%p40_p1), [#allocation6], 4294965760  ;;  %v188_v0 = vld [vmem:[#allocation5 + $0x48] sm:$0xff]  ;;  %v185_v1 = vld [vmem:[#allocation5 + $0x30] sm:$0xff]  ;;  %vm191_vm0 = vcmask 261120   ;;  %v275_v11 = vlaneseq  ;;  %vm281_vm2 = vcmask 64512  }
  0x2f   : > { %v189_v2 = vld [vmem:[#allocation5 + $0x50] sm:$0xff]  ;;  %207 = vmatpush.msra.mxu0 %v188_v0  ;;  %v186_v3 = vld [vmem:[#allocation5 + $0x38] sm:$0xff]  ;;  %v183_v5 = vld [vmem:[#allocation5 + $0x20] sm:$0xff]  ;;  %s442_s17 = sshll.u32 %s682_s16, 3  ;;  %s177_s13 = scalar_lea.vmem [#allocation7], %s434_s4  ;;  %vm329_vm7 = vcmask 130048  }
  0x30   : > { %227 = vmatpush.msra.mxu1 %v189_v2  ;;  %v182_v4 = vld [vmem:[#allocation5 + $0x18] sm:$0xff]  ;;  %v179_v6 = vld [vmem:[#allocation5] sm:$0xff]  ;;  %v180_v7 = vld [vmem:[#allocation5 + $0x8] sm:$0xff]  ;;  %v276_v12 = vshrl.u32 %v275_v11, 7  ;;  %v278_v13 = vand.u32 127, %v275_v11  ;;  %s342_s8 = scalar_lea.hbm %s806_s2, %s442_s17  ;;  %s344_s14 = sshll.u32 %s177_s13, 4  ;;  %s345_s14 = int_to_ptr.vmem [resolvable:$true] %s344_s14 }
  0x31   : > { %208 = vmatpush.msra.mxu0 %v185_v1  ;;  %v178_v8 = vld [vmem:[%s151_s6] sm:$0xff]  ;;  %v187_v18 = vld [vmem:[#allocation5 + $0x40] sm:$0xff]  ;;  %v184_v19 = vld [vmem:[#allocation5 + $0x28] sm:$0xff]  ;;  %s346_s15 = sshll.u32 %s342_s8, 4  ;;  %s332_s18 = scalar_lea.sflag [#allocation4], %s749_s29  ;;  %s347_s15 = int_to_ptr.hbm [resolvable:$true] %s346_s15 }
  0x32   : > { %228 = vmatpush.msra.mxu1 %v186_v3  ;;  %vm279_vm1 = vcmp.ge.s32.totalorder %v276_v12, %v278_v13  ;;  %v190_v17 = vld [vmem:[#allocation5 + $0x58] sm:$0xff]  ;;  %v181_v20 = vld [vmem:[#allocation5 + $0x10] sm:$0xff]  ;;  %s582_s19 = sshra.s32 %s347_s15, 4  ;;  %s588_s22 = scalar_lea.hbm %s806_s2, 16  ;;  %s583_s19 = int_to_ptr.hbm [resolvable:$true] %s582_s19 }
  0x33   : > { %209 = vmatpush.msra.mxu0 %v182_v4  ;;  %247 = vmatpush.msra.mxu2 %v190_v17  ;;  %s584_s20 = scalar_lea.hbm %s583_s19, 8  ;;  %p589_p12 = scmp.lt.s32.totalorder %s583_s19, %s806_s2 }
  0x34   : > { %229 = vmatpush.msra.mxu1 %v183_v5  ;;  %p585_p1 = scmp.ne.s32.totalorder %s583_s19, %s584_s20  ;;  %p590_p8 = scmp.lt.s32.totalorder %s588_s22, %s584_s20 }
  0x35   : > { %210 = vmatpush.msra.mxu0 %v179_v6  ;;  %248 = vmatpush.msra.mxu2 %v187_v18 }
  0x36   : > { %230 = vmatpush.msra.mxu1 %v180_v7  ;;  %437 = vmatmul.msk.f32.vlgmr.msra.gmra.mxu0 %vm191_vm0, %v178_v8  ;;  %p586_p3 = pnand %p585_p1, %p718_p13  ;;  %p591_p7 = por %p590_p8, %p589_p12 }
  0x37   : > { %438 = vmatmul.msk.f32.vlgmr.msra.gmra.mxu1 %vm191_vm0, %v178_v8  ;;  %249 = vmatpush.msra.mxu2 %v184_v19 }
  0x38   : > { %p587_p5 = pneg %p586_p3 }
  0x39   : > { %250 = vmatpush.msra.mxu2 %v181_v20 }
  0x3a   : > { %439 = vmatmul.msk.f32.vlgmr.msra.gmra.mxu2 %vm191_vm0, %v178_v8  ;;  %p592_p9 = pnand %p591_p7, %p587_p5 }
  0xb3   : > { %v212_v9 = vpop.f32.mrf.mxu0 }
  0xb4   : > { %270 = vmatpush.xpose.msra.mxu3 %v212_v9  ;;  %v232_v10 = vpop.f32.mrf.mxu1 }
  0xb7   : > { %271 = vmatmul.f32.vlgmr.msra.gmra.mxu3 %v232_v10 }
  0xbd   : > { %v252_v26 = vpop.f32.mrf.mxu2 }
  0xbe   : > { %324 = vmatpush.msrb.mxu3 %v252_v26 }
 0x13a   : > { %v272_v14 = vpop.f32.mrf.mxu3 }
 0x13b   : > { %v280_v15 = vsel %vm279_vm1, %v272_v14, -inf }
 0x13c   : > { %v282_v16 = vsel %vm281_vm2, %v280_v15, -inf }
 0x13d   : > { %283 = vmax.xlane.f32.xlu0 %v282_v16 }
 0x1b0   : > { %v284_v21 = vpop.xlane.xlu0 %283 }
 0x1b1   : > { %v285_v22 = vsub.f32 %v280_v15, %v284_v21 }
 0x1b3   : > { %v286_v23 = vmul.f32 1.442695, %v285_v22 }
 0x1b5   : > { %504 = vpow2.f32 %v286_v23 }
 0x1bb   : > { %v505_v24 = vpop.eup %504 }
 0x1bc   : > { %v288_v25 = vsel %vm281_vm2, %v505_v24, 0.0 }
 0x1bd   : > { %289 = vadd.xlane.f32.xlu0 %v288_v25 }
 0x230   : > { %v290_v27 = vpop.xlane.xlu0 %289 }
 0x231   : > { %506 = vrcp.f32 %v290_v27  ;;  %v302_v31 = vand.u32 2147483648, %v290_v27  ;;  %v300_v33 = vand.u32 2147483647, %v290_v27  ;;  %vm296_vm4 = vweird.f32 %v290_v27 }
 0x233   : > { %v303_v35 = vor.u32 1.1754944e-38, %v302_v31  ;;  %vm301_vm6 = vcmp.eq.f32.partialorder %v300_v33, 8.507059e+37 }
 0x237   : > { %v507_v28 = vpop.eup %506 }
 0x238   : > { %v292_v29 = vmul.f32 %v507_v28, %v290_v27  ;;  %vm297_vm3 = vweird.f32 %v507_v28 }
 0x239   : > { %vm298_vm5 = vmor %vm296_vm4, %vm297_vm3 }
 0x23a   : > { %v293_v30 = vsub.f32 1.0, %v292_v29 }
 0x23c   : > { %v294_v32 = vmul.f32 %v507_v28, %v293_v30 }
 0x23e   : > { %v295_v34 = vadd.f32 %v507_v28, %v294_v32 }
 0x240   : > { %v299_v36 = vsel %vm298_vm5, %v507_v28, %v295_v34 }
 0x241   : > { %v304_v37 = vsel %vm301_vm6, %v303_v35, %v299_v36 }
 0x242   : > { %v305_v38 = vmul.f32 %v505_v24, %v304_v37 }
 0x244   : > { %440 = vmatmul.msk.f32.vlgmr.msrb.gmra.mxu3 %vm281_vm2, %v305_v38 }
 0x2c7   : > { %v326_v39 = vpop.f32.mrf.mxu3 }
 0x2c8   : > { %330 = vst.msk [vmem:[%s177_s13] sm:$0xff] %vm329_vm7, %v326_v39 }
 0x2c9   : > { %595 = shalt.err (!%p592_p9)
}
 0x2ca   : > { %451 = dma.vmem_to_hbm [thread:$0]  (%p718_p13), %s345_s14, 128, %s347_s15, %s332_s18  }
 0x2cb PF: > { %s358_s3 = sand.u32 1, %s626_s9   ;;  %p812_p10 = scmp.ge.s32.totalorder %s638_s12, 2 }
 0x2cc   : > { %s359_s29 = scalar_lea.sflag [#allocation4], %s358_s3 }
 0x2cd   : > { %p462_p11 = pnand %p812_p10, %p723_p4 }
 0x2cf   : > { %p463_p0 = pneg %p462_p11 }
 0x2d1   : > { %621 = dma.done.wait (%p463_p0), %s359_s29, 128  }
 0x2d2   : > { %623 = vsyncadd (%p463_p0), %s359_s29, 4294967168  ;;  %p16_p2 = scmp.ge.s32.totalorder %s698_s23, 4   ;;  %s813_s9 = smov %s630_s10 }
 0x2d3   : > { %s814_s10 = smov %s634_s11  ;;  %s815_s11 = smov %s710_s26 }
 0x2d4   : > { %s816_s12 = smov %s698_s23  ;;  %18 = sbr.rel (!%p16_p2) target bundleno = 6 (0x6), region = 77 }
 0x2d9   :  { %365 = vsyncpa [#allocation3], 1 }
 0x2da   :  { %367 = vsyncpa [#allocation3 + $0x1], 1 }
 0x2db   :  { %368 = vsyncpa [#allocation6], 1 }
 0x2dc   :  { %369 = vsyncpa [#allocation4], 1 }
 0x2dd   :  { %371 = vsyncpa [#allocation4 + $0x1], 1 }

</bundles_post_ra>
